<compile_context>
chip_gen: v7x
topology: tpu7x:2x2x1
jax: 0.10.0
libtpu: 0.0.40
codegen_flags: <defaults>
</compile_context>

<pallas_src>
import jax
import jax.numpy as jnp
from jax.experimental import pallas as pl
from jax.experimental.pallas import tpu as pltpu

# Module constants (from TankSystem.__init__)
A_COEF = 0.6   # self.a
B_COEF = 0.5   # self.b
H_STEP = 0.1   # self.h
STATE_DIM = 1

_LANES = 128
_SUBLANES = 8


def _round_up(x, m):
    return ((x + m - 1) // m) * m


def _max_tile_rows():
    """Per-generation cap on tile rows. Keeps the double-buffered footprint
    inside scoped-VMEM defaults: <=10 MiB on v5e (16 MiB default),
    <=20 MiB on v6e/v7x (32 MiB default)."""
    try:
        kind = jax.devices()[0].device_kind.lower()
    except Exception:
        return 2048
    if "v6" in kind or "v7" in kind:
        return 4096
    return 2048


def _pick_divisor_tile(rows, cap):
    """Largest tile_rows (multiple of 8, <= cap) that divides `rows`, preferring
    >=2 grid blocks so dimension_semantics=('parallel',) can shard the grid
    across both v7x TensorCores."""
    if rows <= _SUBLANES:
        return rows
    upper = rows // 2 if rows >= 2 * _SUBLANES else rows
    upper = max(_SUBLANES, (min(cap, upper) // _SUBLANES) * _SUBLANES)
    t = upper
    while t >= _SUBLANES:
        if rows % t == 0:
            return t
        t -= _SUBLANES
    return _SUBLANES


def _plan_tiling(n_elems, cap):
    """Return (rows, tile_rows, needs_pad) for the lane-dense (rows, 128) slab."""
    rows_exact = pl.cdiv(n_elems, _LANES)
    fast = (n_elems % _LANES == 0) and (rows_exact % _SUBLANES == 0)
    if fast:
        return rows_exact, _pick_divisor_tile(rows_exact, cap), False
    rows_min = max(_SUBLANES, _round_up(rows_exact, _SUBLANES))
    if rows_min <= 2 * _SUBLANES:
        return rows_min, rows_min, True
    n_blocks = max(2, pl.cdiv(rows_min, cap))
    tile_rows = min(cap, _round_up(pl.cdiv(rows_min, n_blocks), _SUBLANES))
    rows = _round_up(rows_min, tile_rows)
    return rows, tile_rows, True


# ----------------------------- kernels --------------------------------------

def _tank_kernel_x_scalar(s_ref, u_ref, w_ref, y_ref, xp_ref):
    # s_ref (SMEM f32[3]) = [x0, a*sqrt(x0), 1/(b+x0)] precomputed in wrapper.
    x0 = s_ref[0]
    a_sqrt_x0 = s_ref[1]
    inv0 = s_ref[2]
    f = inv0 * (A_COEF * jnp.sqrt(u_ref[...]) - a_sqrt_x0)
    xp = x0 + H_STEP * f + w_ref[...]
    y_ref[...] = jnp.maximum(xp, 0.0)
    xp_ref[...] = xp


def _tank_kernel_x_array(x_ref, u_ref, w_ref, y_ref, xp_ref):
    x = x_ref[...]
    inv = 1.0 / (B_COEF + x)
    f = inv * (A_COEF * jnp.sqrt(u_ref[...]) - A_COEF * jnp.sqrt(x))
    xp = x + H_STEP * f + w_ref[...]
    y_ref[...] = jnp.maximum(xp, 0.0)
    xp_ref[...] = xp


def _tank_simulate_kernel(x0_ref, u_ref, w_ref, y_ref, x_state):
    # State (1, B_pad) lives in VMEM scratch across the sequential time grid.
    @pl.when(pl.program_id(0) == 0)
    def _():
        x_state[...] = jnp.full_like(x_state, x0_ref[0])

    def step(r, carry):
        x = x_state[...]
        u_t = u_ref[pl.ds(r, 1), :]
        w_t = w_ref[pl.ds(r, 1), :]
        inv = 1.0 / (B_COEF + x)
        f = inv * (A_COEF * jnp.sqrt(u_t) - A_COEF * jnp.sqrt(x))
        xp = x + H_STEP * f + w_t
        x_new = jnp.maximum(xp, 0.0)        # simulate() carries relu(x_plus)
        y_ref[pl.ds(r, 1), :] = x_new
        x_state[...] = x_new
        return carry

    jax.lax.fori_loop(0, u_ref.shape[0], step, 0)


# ----------------------------- wrappers --------------------------------------

@jax.jit
def tank_forward(x, u, w):
    """Pallas implementation of TankSystem.forward.

    x: scalar x_init (any size-1 array) or array broadcastable to u's shape.
    u: (B, T, STATE_DIM)   (T == 1 in the module's forward).
    w: anything reshapeable to (B, 1, STATE_DIM)  (matches w.view(-1,1,D)).
    returns (relu(x_plus), x_plus), both (B, T, STATE_DIM) float32.
    """
    u = jnp.asarray(u, jnp.float32)
    Bsz, T, D = u.shape
    N = Bsz * T * D

    w = jnp.asarray(w, jnp.float32).reshape(Bsz, 1, D)
    if T > 1:
        w = jnp.broadcast_to(w, (Bsz, T, D))

    x = jnp.asarray(x, jnp.float32)
    x_is_scalar = (x.size == 1)

    cap = _max_tile_rows()
    rows, tile_rows, needs_pad = _plan_tiling(N, cap)
    n_padded = rows * _LANES

    def to_slab(a, fill):
        flat = a.reshape(-1)
        if needs_pad:
            flat = jnp.pad(flat, (0, n_padded - N), constant_values=fill)
        return flat.reshape(rows, _LANES)

    u_slab = to_slab(u, 1.0)   # pad fill keeps sqrt() NaN-free in dead lanes
    w_slab = to_slab(w, 0.0)

    tile_spec = pl.BlockSpec((tile_rows, _LANES), lambda i: (i, 0))
    grid = (rows // tile_rows,)
    out_shape = (jax.ShapeDtypeStruct((rows, _LANES), jnp.float32),
                 jax.ShapeDtypeStruct((rows, _LANES), jnp.float32))

    if x_is_scalar:
        x0 = x.reshape(())
        scalars = jnp.stack([x0, A_COEF * jnp.sqrt(x0), 1.0 / (B_COEF + x0)])
        kernel = _tank_kernel_x_scalar
        in_specs = [pl.BlockSpec(memory_space=pltpu.MemorySpace.SMEM),
                    tile_spec, tile_spec]
        args = (scalars, u_slab, w_slab)
        fuse = [False, True, True]
    else:
        # Per-batch state (e.g. inside simulate): size already B*T*D, so the
        # broadcast is a reshape, not an HBM-materialized expansion.
        x_full = jnp.broadcast_to(x, (Bsz, T, D))
        kernel = _tank_kernel_x_array
        in_specs = [tile_spec, tile_spec, tile_spec]
        args = (to_slab(x_full, 1.0), u_slab, w_slab)
        fuse = [True, True, True]

    compiler_params = pltpu.CompilerParams(
        dimension_semantics=("parallel",),
        allow_input_fusion=fuse if needs_pad else None)

    y_slab, xp_slab = pl.pallas_call(
        kernel,
        out_shape=out_shape,
        grid=grid,
        in_specs=in_specs,
        out_specs=(tile_spec, tile_spec),
        compiler_params=compiler_params,
    )(*args)

    if needs_pad:
        y = y_slab.reshape(-1)[:N].reshape(Bsz, T, D)
        x_plus = xp_slab.reshape(-1)[:N].reshape(Bsz, T, D)
    else:
        y = y_slab.reshape(Bsz, T, D)
        x_plus = xp_slab.reshape(Bsz, T, D)
    return y, x_plus


@jax.jit
def tank_simulate(x_init, u, w):
    """Fused rollout of TankSystem.simulate (scalar x_init, the module default):
    one pallas_call; x never round-trips HBM between timesteps."""
    # TODO(synk): tank_simulate assumes a scalar x_init; a per-row x_init would
    # need an extra (1, B_pad) VMEM input to seed the state scratch.
    u = jnp.asarray(u, jnp.float32)
    w = jnp.asarray(w, jnp.float32)
    Bsz, T, D = u.shape
    assert D == STATE_DIM == 1
    x0 = jnp.asarray(x_init, jnp.float32).reshape(())

    b_pad = _round_up(Bsz, _LANES)
    # Keep each (Tc, b_pad) block <= ~512 KiB (3 slabs x 2 buffers stays tiny).
    tc_cap = max(_SUBLANES, ((1 << 19) // (b_pad * 4)) // _SUBLANES * _SUBLANES)
    tc = min(_round_up(T, _SUBLANES), tc_cap)
    t_pad = _round_up(T, tc)

    def to_slab(a, fill):  # (B, T, 1) -> (t_pad, b_pad): time on sublanes, batch on lanes
        a2 = jnp.transpose(a[:, :, 0], (1, 0))
        return jnp.pad(a2, ((0, t_pad - T), (0, b_pad - Bsz)),
                       constant_values=fill)

    u_slab = to_slab(u, 1.0)
    w_slab = to_slab(w, 0.0)
    tile_spec = pl.BlockSpec((tc, b_pad), lambda t: (t, 0))

    y_slab = pl.pallas_call(
        _tank_simulate_kernel,
        out_shape=jax.ShapeDtypeStruct((t_pad, b_pad), jnp.float32),
        grid=(t_pad // tc,),
        in_specs=[pl.BlockSpec(memory_space=pltpu.MemorySpace.SMEM),
                  tile_spec, tile_spec],
        out_specs=tile_spec,
        scratch_shapes=[pltpu.VMEM((1, b_pad), jnp.float32)],
        compiler_params=pltpu.CompilerParams(
            dimension_semantics=("arbitrary",)),   # sequential recurrence
    )(x0.reshape(1), u_slab, w_slab)

    return jnp.transpose(y_slab[:T, :Bsz], (1, 0)).reshape(Bsz, T, D)


# ----------------------------- references ------------------------------------

def tank_forward_ref(x, u, w):
    """Pure-JAX reference mirroring the PyTorch module exactly."""
    x = jnp.asarray(x, jnp.float32)
    u = jnp.asarray(u, jnp.float32)
    Bsz, _, D = u.shape
    w = jnp.asarray(w, jnp.float32).reshape(Bsz, 1, D)
    f = (1.0 / (B_COEF + x)) * (-A_COEF * jnp.sqrt(x) + A_COEF * jnp.sqrt(u))
    x_plus = x + H_STEP * f + w
    return jnp.maximum(x_plus, 0.0), x_plus


def tank_simulate_ref(x_init, u, w):
    Bsz, T, D = u.shape
    x = jnp.asarray(x_init, jnp.float32)
    ys = []
    for t in range(T):
        x, _ = tank_forward_ref(x, u[:, t:t + 1, :], w[:, t:t + 1, :])
        ys.append(x)
    return jnp.concatenate(ys, axis=1)


if __name__ == "__main__":
    key = jax.random.PRNGKey(0)
    k_u, k_w, k_x, k_u2, k_w2 = jax.random.split(key, 5)

    # Case 1: scalar x_init = 1.1, small ragged batch (padded path).
    batch = 2
    x0 = jnp.array(1.1, dtype=jnp.float32)
    u = jax.random.uniform(k_u, (batch, 1, STATE_DIM), jnp.float32,
                           minval=0.1, maxval=2.0)
    w = 0.01 * jax.random.normal(k_w, (batch, STATE_DIM), jnp.float32)
    y, xp = tank_forward(x0, u, w)
    jax.block_until_ready((y, xp))
    y_r, xp_r = tank_forward_ref(x0, u, w)
    assert y.shape == (batch, 1, STATE_DIM) and xp.shape == (batch, 1, STATE_DIM)
    assert jnp.allclose(y, y_r, atol=1e-6)
    assert jnp.allclose(xp, xp_r, atol=1e-6)

    # Case 2: per-batch state x (as produced inside simulate()).
    x_batch = jax.random.uniform(k_x, (batch, 1, STATE_DIM), jnp.float32,
                                 minval=0.2, maxval=1.5)
    y2, xp2 = tank_forward(x_batch, u, w)
    jax.block_until_ready((y2, xp2))
    y2_r, xp2_r = tank_forward_ref(x_batch, u, w)
    assert jnp.allclose(y2, y2_r, atol=1e-6)
    assert jnp.allclose(xp2, xp2_r, atol=1e-6)

    # Case 3: pad-free fast path (N multiple of 8*128) with >=2 grid blocks.
    big = 4096
    u_big = jax.random.uniform(k_u2, (big, 1, STATE_DIM), jnp.float32,
                               minval=0.1, maxval=2.0)
    w_big = 0.01 * jax.random.normal(k_w2, (big, STATE_DIM), jnp.float32)
    y3, xp3 = tank_forward(x0, u_big, w_big)
    jax.block_until_ready((y3, xp3))
    y3_r, xp3_r = tank_forward_ref(x0, u_big, w_big)
    assert jnp.allclose(y3, y3_r, atol=1e-6)
    assert jnp.allclose(xp3, xp3_r, atol=1e-6)

    # Case 4: fused rollout (simulate) — single pallas_call for all timesteps.
    horizon = 16
    u_t = jax.random.uniform(k_u, (batch, horizon, STATE_DIM), jnp.float32,
                             minval=0.1, maxval=2.0)
    w_t = 0.01 * jax.random.normal(k_w, (batch, horizon, STATE_DIM), jnp.float32)
    y_traj = tank_simulate(x0, u_t, w_t)
    jax.block_until_ready(y_traj)
    y_traj_r = tank_simulate_ref(x0, u_t, w_t)
    assert y_traj.shape == (batch, horizon, STATE_DIM)
    assert jnp.allclose(y_traj, y_traj_r, atol=1e-5)

    print("KERNEL_OK")
</pallas_src>

<mosaic_0001>
module attributes {stable_mosaic.version = 11 : i64} {
  func.func @_tank_kernel_x_scalar(%arg0: i32, %arg1: memref<3xf32, #tpu.memory_space<smem>>, %arg2: memref<8x128xf32, #tpu.memory_space<vmem>>, %arg3: memref<8x128xf32, #tpu.memory_space<vmem>>, %arg4: memref<8x128xf32, #tpu.memory_space<vmem>>, %arg5: memref<8x128xf32, #tpu.memory_space<vmem>>) attributes {dimension_semantics = [#tpu.dimension_semantics<parallel>], iteration_bounds = array<i64: 1>, scalar_prefetch = 0 : i64, scratch_operands = 0 : i64, tpu.core_type = #tpu.core_type<tc>, window_params = [{transform_indices = @transform_0, window_bounds = array<i64: 3>}, {transform_indices = @transform_1, window_bounds = array<i64: 8, 128>}, {transform_indices = @transform_2, window_bounds = array<i64: 8, 128>}, {transform_indices = @transform_3, window_bounds = array<i64: 8, 128>}, {transform_indices = @transform_4, window_bounds = array<i64: 8, 128>}]} {
    %c0 = arith.constant 0 : index
    %0 = memref.load %arg1[%c0] : memref<3xf32, #tpu.memory_space<smem>>
    %c1 = arith.constant 1 : index
    %1 = memref.load %arg1[%c1] : memref<3xf32, #tpu.memory_space<smem>>
    %c2 = arith.constant 2 : index
    %2 = memref.load %arg1[%c2] : memref<3xf32, #tpu.memory_space<smem>>
    %c0_0 = arith.constant 0 : index
    %c0_1 = arith.constant 0 : index
    %3 = vector.load %arg2[%c0_0, %c0_1] : memref<8x128xf32, #tpu.memory_space<vmem>>, vector<8x128xf32>
    %4 = math.sqrt %3 : vector<8x128xf32>
    %cst = arith.constant 6.000000e-01 : f32
    %5 = vector.broadcast %cst : f32 to vector<8x128xf32>
    %6 = arith.mulf %5, %4 : vector<8x128xf32>
    %7 = vector.broadcast %1 : f32 to vector<8x128xf32>
    %8 = arith.subf %6, %7 : vector<8x128xf32>
    %9 = vector.broadcast %2 : f32 to vector<8x128xf32>
    %10 = arith.mulf %9, %8 : vector<8x128xf32>
    %cst_2 = arith.constant 1.000000e-01 : f32
    %11 = vector.broadcast %cst_2 : f32 to vector<8x128xf32>
    %12 = arith.mulf %11, %10 : vector<8x128xf32>
    %13 = vector.broadcast %0 : f32 to vector<8x128xf32>
    %14 = arith.addf %13, %12 : vector<8x128xf32>
    %c0_3 = arith.constant 0 : index
    %c0_4 = arith.constant 0 : index
    %15 = vector.load %arg3[%c0_3, %c0_4] : memref<8x128xf32, #tpu.memory_space<vmem>>, vector<8x128xf32>
    %16 = arith.addf %14, %15 : vector<8x128xf32>
    %cst_5 = arith.constant 0.000000e+00 : f32
    %17 = vector.broadcast %cst_5 : f32 to vector<8x128xf32>
    %18 = arith.maximumf %16, %17 : vector<8x128xf32>
    %c0_6 = arith.constant 0 : index
    %c0_7 = arith.constant 0 : index
    %19 = vector.load %arg4[%c0_6, %c0_7] : memref<8x128xf32, #tpu.memory_space<vmem>>, vector<8x128xf32>
    tpu.vector_store %arg4[%c0_6, %c0_7], %18 {strides = array<i32>} : memref<8x128xf32, #tpu.memory_space<vmem>>, vector<8x128xf32>,
    %c0_8 = arith.constant 0 : index
    %c0_9 = arith.constant 0 : index
    %20 = vector.load %arg5[%c0_8, %c0_9] : memref<8x128xf32, #tpu.memory_space<vmem>>, vector<8x128xf32>
    tpu.vector_store %arg5[%c0_8, %c0_9], %16 {strides = array<i32>} : memref<8x128xf32, #tpu.memory_space<vmem>>, vector<8x128xf32>,
    return
  }
  func.func @transform_0(%arg0: i32) -> i32 {
    %c0_i32 = arith.constant 0 : i32
    %c0_i32_0 = arith.constant 0 : i32
    return %c0_i32 : i32
  }
  func.func @transform_1(%arg0: i32) -> (i32, i32) {
    %c0_i32 = arith.constant 0 : i32
    %c0_i32_0 = arith.constant 0 : i32
    return %arg0, %c0_i32 : i32, i32
  }
  func.func @transform_2(%arg0: i32) -> (i32, i32) {
    %c0_i32 = arith.constant 0 : i32
    %c0_i32_0 = arith.constant 0 : i32
    return %arg0, %c0_i32 : i32, i32
  }
  func.func @transform_3(%arg0: i32) -> (i32, i32) {
    %c0_i32 = arith.constant 0 : i32
    %c0_i32_0 = arith.constant 0 : i32
    return %arg0, %c0_i32 : i32, i32
  }
  func.func @transform_4(%arg0: i32) -> (i32, i32) {
    %c0_i32 = arith.constant 0 : i32
    %c0_i32_0 = arith.constant 0 : i32
    return %arg0, %c0_i32 : i32, i32
  }
}

</mosaic_0001>

<bundles_post_ra>
// kernel: tank_forward.2
= control target key start
LH: loop header
LB: loop body
LE: loop exit
PB: predicated region body
PF: predicated region fallthrough
CT: control target
= control target key end

     0   :  { %s164_s0 = inlined_call_operand.vmem [shape: f32[3], index: 0, kind: input, shape index: {}]   ;;  %s165_s1 = inlined_call_operand.vmem [shape: f32[2], index: 1, kind: input, shape index: {}]   ;;  %s166_s2 = inlined_call_operand.<no memory space> [shape: f32[], index: 2, kind: input, shape index: {}]   ;;  %s167_s3 = inlined_call_operand.vmem [shape: f32[2], index: 3, kind: input, shape index: {}]   ;;  %s168_s4 = inlined_call_operand.<no memory space> [shape: f32[], index: 4, kind: input, shape index: {}]   ;;  %s169_s5 = inlined_call_operand.vmem [shape: f32[8,128], index: 5, kind: output, shape index: {0}]   ;;  %s170_s6 = inlined_call_operand.vmem [shape: f32[8,128], index: 6, kind: output, shape index: {1}]  }
   0x1   :  { %v12_v0 = vstv %s168_s4  ;;  %v13_v1 = vstv %s166_s2 }
   0x2   :  { %14 = vsyncpa [#allocation13], 0  ;;  %s21_s27 = sshll.u32 %s164_s0, 4  ;;  %s22_s27 = int_to_ptr.vmem [resolvable:$true] %s21_s27 }
   0x3   :  { %s85_s28 = scalar_lea.vmem %s22_s27, 16  ;;  %p90_p1 = scmp.lt.s32.totalorder %s22_s27, %s22_s27 }
   0x4   :  { %p86_p0 = scmp.ne.s32.totalorder %s22_s27, %s85_s28  ;;  %p91_p2 = scmp.lt.s32.totalorder %s85_s28, %s85_s28 }
   0x6   :  { %p92_p3 = por %p91_p2, %p90_p1 }
   0x8   :  { %p93_p4 = pnand %p92_p3, %p86_p0 }
   0xa   :  { %96 = shalt.err (!%p93_p4)
}
   0xb   :  { %s99_s29 = smov [#allocation12]  }
   0xc   :  { %24 = dma.vmem_to_smem %s22_s27, 16, %s99_s29, [#allocation13]  }
   0xd   :  { %97 = dma.done.wait [#allocation13], 16  }
   0xe   :  { %98 = vsyncadd [#allocation13], 4294967280 }
   0xf   :  { %32 = sfence }
  0x10   :  { %v33_v2 = vld [vmem:[%s167_s3] sm:$0x1]  ;;  %v34_v3 = vlaneseq  ;;  %s80_s0 = sld [smem:[#allocation12 + $0x1]]  ;;  %s81_s30 = sld [smem:[#allocation12 + $0x2]] }
  0x11   :  { %s47_s7 = sld [smem:[#allocation12]]  ;;  %v40_v15 = vld [vmem:[%s165_s1] sm:$0x1] }
  0x12   :  { %vm147_vm0 = vcmp.lt.s32.totalorder %v34_v3, 2 }
  0x13   :  { %v37_v5 = vsel %vm147_vm0, %v33_v2, %v12_v0  ;;  %v44_v19 = vsel %vm147_vm0, %v40_v15, %v13_v1 }
  0x14   :  { %83 = vrsqrt.f32 %v37_v5  ;;  %vm53_vm1 = vcmp.eq.f32.partialorder %v37_v5, inf  ;;  %v56_v7 = vand.u32 2147483648, %v37_v5  ;;  %vm55_vm2 = vcmp.eq.f32.partialorder %v37_v5, 0.0 }
  0x16   :  { %v59_v11 = vstv %s80_s0  ;;  %v61_v13 = vstv %s81_s30 }
  0x17   :  { %v64_v17 = vstv %s47_s7 }
  0x1e   :  { %v84_v6 = vpop.eup %83 }
  0x1f   :  { %v52_v8 = vmul.f32 %v84_v6, %v37_v5 }
  0x21   :  { %v54_v9 = vsel %vm53_vm1, %v37_v5, %v52_v8 }
  0x22   :  { %v57_v10 = vsel %vm55_vm2, %v56_v7, %v54_v9 }
  0x23   :  { %v58_v12 = vmul.f32 0.6, %v57_v10 }
  0x25   :  { %v60_v14 = vsub.f32 %v58_v12, %v59_v11 }
  0x27   :  { %v62_v16 = vmul.f32 %v61_v13, %v60_v14 }
  0x29   :  { %v63_v18 = vmul.f32 0.1, %v62_v16 }
  0x2b   :  { %v65_v20 = vadd.f32 %v64_v17, %v63_v18 }
  0x2d   :  { %v67_v21 = vadd.f32 %v65_v20, %v44_v19 }
  0x2f   :  { %v68_v22 = vmax.f32 %v67_v21, 0.0  ;;  %70 = vst [vmem:[%s170_s6] sm:$0xff] %v67_v21 }
  0x31   :  { %69 = vst [vmem:[%s169_s5] sm:$0xff] %v68_v22 }
  0x32   :  { %79 = vsyncpa [#allocation13], 1 }

</bundles_post_ra>
